<compile_context>
chip_gen: v6e
topology: v6e:2x2x1
jax: 0.10.0
libtpu: 0.0.40
codegen_flags: <defaults>
</compile_context>

<pallas_src>
import jax
import jax.numpy as jnp
from jax.experimental import pallas as pl
from jax.experimental.pallas import tpu as pltpu

HIDDEN_1 = 32
HIDDEN_2 = 64


def _policy_kernel(x_ref, w1_ref, b1_ref, w2_ref, b2_ref, wh_ref, bh_ref, out_ref):
    """Transposed (feature-major, batch-minor) forward on one (., TB) batch tile.

    x_ref   : (obs_dim, TB)   -- batch on the 128-wide lane axis
    w*_ref  : PyTorch (out, in) layout;  b*_ref : (out, 1) columns
    out_ref : (2*act_dim, TB) -- rows [:act_dim] = action means,
                                 rows [act_dim:] = softplus(stddev logits)
    """
    cdtype = w1_ref.dtype
    x = x_ref[...]
    if x.dtype != cdtype:                 # matches PyTorch x.float() (or bf16 compute)
        x = x.astype(cdtype)

    # shared_net: Linear -> Tanh -> Linear -> Tanh; MXU N = TB (lane-dense).
    h1 = jnp.tanh(
        jnp.dot(w1_ref[...], x, preferred_element_type=jnp.float32) + b1_ref[...])
    h2 = jnp.tanh(
        jnp.dot(w2_ref[...], h1.astype(cdtype), preferred_element_type=jnp.float32)
        + b2_ref[...])

    # Fused heads: one matmul producing rows [mean | stddev_logits].
    heads = (jnp.dot(wh_ref[...], h2.astype(cdtype), preferred_element_type=jnp.float32)
             + bh_ref[...])

    act_dim = heads.shape[0] // 2         # static at trace time
    # softplus (F.softplus, threshold=20) on the stddev rows only, selected with a
    # sublane (row) mask so the store stays a single full-width unmasked vst.
    # NOTE: exp() is evaluated unconditionally; for logits > ~88 it overflows to
    # +inf, but that branch is discarded by where(heads > 20, heads, ...) -- benign.
    row = jax.lax.broadcasted_iota(jnp.int32, heads.shape, dimension=0)
    soft = jnp.where(heads > 20.0, heads, jnp.log1p(jnp.exp(heads)))
    out_ref[...] = jnp.where(row >= act_dim, soft, heads)


def _round_up(n, m):
    return ((n + m - 1) // m) * m


def policy_net_forward(x, params, *, block_b=2048, compute_dtype=jnp.float32):
    """x: (B, obs_dim). params: dict from init_params (pre-transposed / pre-packed).
    Returns (action_means, action_stddevs), each (B, act_dim) float32."""
    B, obs_dim = x.shape
    two_act = params["wh"].shape[0]
    act_dim = two_act // 2

    # Optional bf16 operands (v6e/v7x): f32 accumulation, f32 biases.
    w1 = params["w1"].astype(compute_dtype)
    w2 = params["w2"].astype(compute_dtype)
    wh = params["wh"].astype(compute_dtype)
    b1, b2, bh = params["b1"], params["b2"], params["bh"]

    # Transposed input: (obs_dim, B) puts the batch on the lane axis.
    xt = x.T
    if xt.dtype != compute_dtype:
        xt = xt.astype(compute_dtype)

    # Batch tile: lane-dense (multiple of 128) or the full batch.  The whole
    # problem is tens of KB per step, so TB is sized for grid-step overhead
    # (v5e/v6e serial grid) and dual-TC balance (v7x), not for VMEM.
    block_b = max(128, _round_up(block_b, 128))
    if B <= 256:
        TB = B                                            # single full-array block
    else:
        TB = min(block_b, _round_up(pl.cdiv(B, 2), 128))  # >= 2 steps, big tiles
    grid = (pl.cdiv(B, TB),)

    def resident(arr):
        # Full-array block, constant block index -> stays in VMEM across steps.
        return pl.BlockSpec(arr.shape, lambda i: (0, 0))

    fused = pl.pallas_call(
        _policy_kernel,
        out_shape=jax.ShapeDtypeStruct((two_act, B), jnp.float32),
        grid=grid,
        in_specs=[
            pl.BlockSpec((obs_dim, TB), lambda i: (0, i)),   # x^T: per-step tile
            resident(w1), resident(b1),
            resident(w2), resident(b2),
            resident(wh), resident(bh),
        ],
        out_specs=pl.BlockSpec((two_act, TB), lambda i: (0, i)),
        compiler_params=pltpu.CompilerParams(
            dimension_semantics=("parallel",),               # megacore on v7x
        ),
    )(xt, w1, b1, w2, b2, wh, bh)

    return fused[:act_dim, :].T, fused[act_dim:, :].T


def init_params(key, obs_dim, act_dim):
    """PyTorch nn.Linear-style init U(-1/sqrt(fan_in), 1/sqrt(fan_in)).

    Weights are stored in PyTorch (out, in) layout, biases as (out, 1) columns
    (kernel-ready for the transposed formulation).  The two head layers are
    pre-packed once into a single (2*act_dim, H2) matrix / (2*act_dim, 1) bias.
    """
    keys = jax.random.split(key, 8)

    def linear(kw, kb, fan_in, fan_out):
        bound = 1.0 / jnp.sqrt(jnp.float32(fan_in))
        w = jax.random.uniform(kw, (fan_out, fan_in), jnp.float32, -bound, bound)
        b = jax.random.uniform(kb, (fan_out, 1), jnp.float32, -bound, bound)
        return w, b

    w1, b1 = linear(keys[0], keys[1], obs_dim, HIDDEN_1)
    w2, b2 = linear(keys[2], keys[3], HIDDEN_1, HIDDEN_2)
    wm, bm = linear(keys[4], keys[5], HIDDEN_2, act_dim)
    ws, bs = linear(keys[6], keys[7], HIDDEN_2, act_dim)
    wh = jnp.concatenate([wm, ws], axis=0)    # (2*act_dim, H2), packed once
    bh = jnp.concatenate([bm, bs], axis=0)    # (2*act_dim, 1)
    return {"w1": w1, "b1": b1, "w2": w2, "b2": b2, "wh": wh, "bh": bh}


def _reference(x, p):
    act_dim = p["wh"].shape[0] // 2
    h1 = jnp.tanh(x.astype(jnp.float32) @ p["w1"].T + p["b1"].T)
    h2 = jnp.tanh(h1 @ p["w2"].T + p["b2"].T)
    heads = h2 @ p["wh"].T + p["bh"].T
    mean = heads[:, :act_dim]
    s = heads[:, act_dim:]
    std = jnp.where(s > 20.0, s, jnp.log1p(jnp.exp(s)))
    return mean, std


if __name__ == "__main__":
    key = jax.random.PRNGKey(0)
    k_x, k_p, k_x2, k_x3 = jax.random.split(key, 4)

    obs_dim = 8      # obs_space_dim
    act_dim = 4      # action_space_dim
    batch = 8        # small smoke-test batch

    x = jax.random.normal(k_x, (batch, obs_dim), dtype=jnp.float32)
    params = init_params(k_p, obs_dim, act_dim)

    means, stddevs = policy_net_forward(x, params)
    jax.block_until_ready((means, stddevs))

    ref_means, ref_stds = _reference(x, params)
    assert means.shape == (batch, act_dim) and stddevs.shape == (batch, act_dim)
    assert jnp.allclose(means, ref_means, atol=1e-5, rtol=1e-5)
    assert jnp.allclose(stddevs, ref_stds, atol=1e-5, rtol=1e-5)
    assert bool(jnp.all(stddevs > 0.0))

    # Larger batch: 2 lane-dense (512-lane) grid steps, "parallel" axis (v7x dual-TC).
    big = 1024
    x_big = jax.random.normal(k_x2, (big, obs_dim), dtype=jnp.float32)
    m_b, s_b = policy_net_forward(x_big, params)
    jax.block_until_ready((m_b, s_b))
    rm_b, rs_b = _reference(x_big, params)
    assert jnp.allclose(m_b, rm_b, atol=1e-5, rtol=1e-5)
    assert jnp.allclose(s_b, rs_b, atol=1e-5, rtol=1e-5)

    # Ragged batch: exercises the partial last block (masked writeback).
    rag = 1000
    x_rag = jax.random.normal(k_x3, (rag, obs_dim), dtype=jnp.float32)
    m_r, s_r = policy_net_forward(x_rag, params)
    jax.block_until_ready((m_r, s_r))
    rm_r, rs_r = _reference(x_rag, params)
    assert jnp.allclose(m_r, rm_r, atol=1e-5, rtol=1e-5)
    assert jnp.allclose(s_r, rs_r, atol=1e-5, rtol=1e-5)

    # bf16 operand path (v6e/v7x): f32 accumulation, loose tolerance.
    m_h, s_h = policy_net_forward(x_big, params, compute_dtype=jnp.bfloat16)
    jax.block_until_ready((m_h, s_h))
    assert m_h.shape == (big, act_dim) and s_h.shape == (big, act_dim)
    assert jnp.allclose(m_h, rm_b, atol=1e-1, rtol=1e-1)
    assert bool(jnp.all(s_h > 0.0))

    print("KERNEL_OK")
</pallas_src>

<mosaic_0001>
module attributes {stable_mosaic.version = 11 : i64} {
  func.func @_policy_kernel(%arg0: i32, %arg1: memref<8x8xf32, #tpu.memory_space<vmem>>, %arg2: memref<32x8xf32, #tpu.memory_space<vmem>>, %arg3: memref<32x1xf32, #tpu.memory_space<vmem>>, %arg4: memref<64x32xf32, #tpu.memory_space<vmem>>, %arg5: memref<64x1xf32, #tpu.memory_space<vmem>>, %arg6: memref<8x64xf32, #tpu.memory_space<vmem>>, %arg7: memref<8x1xf32, #tpu.memory_space<vmem>>, %arg8: memref<8x8xf32, #tpu.memory_space<vmem>>) attributes {dimension_semantics = [#tpu.dimension_semantics<parallel>], iteration_bounds = array<i64: 1>, scalar_prefetch = 0 : i64, scratch_operands = 0 : i64, tpu.core_type = #tpu.core_type<tc>, window_params = [{transform_indices = @transform_0, window_bounds = array<i64: 8, 8>}, {pipeline_mode = #tpu.pipeline_mode<synchronous>, transform_indices = @transform_1, window_bounds = array<i64: 32, 8>}, {pipeline_mode = #tpu.pipeline_mode<synchronous>, transform_indices = @transform_2, window_bounds = array<i64: 32, 1>}, {pipeline_mode = #tpu.pipeline_mode<synchronous>, transform_indices = @transform_3, window_bounds = array<i64: 64, 32>}, {pipeline_mode = #tpu.pipeline_mode<synchronous>, transform_indices = @transform_4, window_bounds = array<i64: 64, 1>}, {pipeline_mode = #tpu.pipeline_mode<synchronous>, transform_indices = @transform_5, window_bounds = array<i64: 8, 64>}, {pipeline_mode = #tpu.pipeline_mode<synchronous>, transform_indices = @transform_6, window_bounds = array<i64: 8, 1>}, {transform_indices = @transform_7, window_bounds = array<i64: 8, 8>}]} {
    %c0 = arith.constant 0 : index
    %c0_0 = arith.constant 0 : index
    %0 = vector.load %arg1[%c0, %c0_0] : memref<8x8xf32, #tpu.memory_space<vmem>>, vector<8x8xf32>
    %c0_1 = arith.constant 0 : index
    %c0_2 = arith.constant 0 : index
    %1 = vector.load %arg2[%c0_1, %c0_2] : memref<32x8xf32, #tpu.memory_space<vmem>>, vector<32x8xf32>
    %cst = arith.constant dense<0.000000e+00> : vector<32x8xf32>
    %2 = tpu.matmul %1, %0, %cst {dimension_numbers = #tpu.dot_dimension_numbers<[1], [0], [0], [1], [0, 0, 1, 1], [], []>} : vector<32x8xf32>, vector<8x8xf32>, vector<32x8xf32> -> vector<32x8xf32>
    %c0_3 = arith.constant 0 : index
    %c0_4 = arith.constant 0 : index
    %3 = vector.load %arg3[%c0_3, %c0_4] : memref<32x1xf32, #tpu.memory_space<vmem>>, vector<32x1xf32>
    %4 = vector.broadcast %3 : vector<32x1xf32> to vector<32x8xf32>
    %5 = arith.addf %2, %4 : vector<32x8xf32>
    %6 = math.tanh %5 : vector<32x8xf32>
    %c0_5 = arith.constant 0 : index
    %c0_6 = arith.constant 0 : index
    %7 = vector.load %arg4[%c0_5, %c0_6] : memref<64x32xf32, #tpu.memory_space<vmem>>, vector<64x32xf32>
    %cst_7 = arith.constant dense<0.000000e+00> : vector<64x8xf32>
    %8 = tpu.matmul %7, %6, %cst_7 {dimension_numbers = #tpu.dot_dimension_numbers<[1], [0], [0], [1], [0, 0, 1, 1], [], []>} : vector<64x32xf32>, vector<32x8xf32>, vector<64x8xf32> -> vector<64x8xf32>
    %c0_8 = arith.constant 0 : index
    %c0_9 = arith.constant 0 : index
    %9 = vector.load %arg5[%c0_8, %c0_9] : memref<64x1xf32, #tpu.memory_space<vmem>>, vector<64x1xf32>
    %10 = vector.broadcast %9 : vector<64x1xf32> to vector<64x8xf32>
    %11 = arith.addf %8, %10 : vector<64x8xf32>
    %12 = math.tanh %11 : vector<64x8xf32>
    %c0_10 = arith.constant 0 : index
    %c0_11 = arith.constant 0 : index
    %13 = vector.load %arg6[%c0_10, %c0_11] : memref<8x64xf32, #tpu.memory_space<vmem>>, vector<8x64xf32>
    %cst_12 = arith.constant dense<0.000000e+00> : vector<8x8xf32>
    %14 = tpu.matmul %13, %12, %cst_12 {dimension_numbers = #tpu.dot_dimension_numbers<[1], [0], [0], [1], [0, 0, 1, 1], [], []>} : vector<8x64xf32>, vector<64x8xf32>, vector<8x8xf32> -> vector<8x8xf32>
    %c0_13 = arith.constant 0 : index
    %c0_14 = arith.constant 0 : index
    %15 = vector.load %arg7[%c0_13, %c0_14] : memref<8x1xf32, #tpu.memory_space<vmem>>, vector<8x1xf32>
    %16 = vector.broadcast %15 : vector<8x1xf32> to vector<8x8xf32>
    %17 = arith.addf %14, %16 : vector<8x8xf32>
    %18 = tpu.iota {dimensions = array<i32: 0>} : vector<8x8xi32>
    %cst_15 = arith.constant 2.000000e+01 : f32
    %19 = vector.broadcast %cst_15 : f32 to vector<8x8xf32>
    %20 = arith.cmpf ogt, %17, %19 : vector<8x8xf32>
    %21 = math.exp %17 : vector<8x8xf32>
    %22 = math.log1p %21 : vector<8x8xf32>
    %23 = arith.select %20, %17, %22 : vector<8x8xi1>, vector<8x8xf32>
    %c4_i32 = arith.constant 4 : i32
    %24 = vector.broadcast %c4_i32 : i32 to vector<8x8xi32>
    %25 = arith.cmpi sge, %18, %24 : vector<8x8xi32>
    %26 = arith.select %25, %23, %17 : vector<8x8xi1>, vector<8x8xf32>
    %c0_16 = arith.constant 0 : index
    %c0_17 = arith.constant 0 : index
    %27 = vector.load %arg8[%c0_16, %c0_17] : memref<8x8xf32, #tpu.memory_space<vmem>>, vector<8x8xf32>
    tpu.vector_store %arg8[%c0_16, %c0_17], %26 {strides = array<i32>} : memref<8x8xf32, #tpu.memory_space<vmem>>, vector<8x8xf32>,
    return
  }
  func.func @transform_0(%arg0: i32) -> (i32, i32) {
    %c0_i32 = arith.constant 0 : i32
    %c0_i32_0 = arith.constant 0 : i32
    return %c0_i32, %arg0 : i32, i32
  }
  func.func @transform_1(%arg0: i32) -> (i32, i32) {
    %c0_i32 = arith.constant 0 : i32
    %c0_i32_0 = arith.constant 0 : i32
    %c0_i32_1 = arith.constant 0 : i32
    return %c0_i32, %c0_i32_0 : i32, i32
  }
  func.func @transform_2(%arg0: i32) -> (i32, i32) {
    %c0_i32 = arith.constant 0 : i32
    %c0_i32_0 = arith.constant 0 : i32
    %c0_i32_1 = arith.constant 0 : i32
    return %c0_i32, %c0_i32_0 : i32, i32
  }
  func.func @transform_3(%arg0: i32) -> (i32, i32) {
    %c0_i32 = arith.constant 0 : i32
    %c0_i32_0 = arith.constant 0 : i32
    %c0_i32_1 = arith.constant 0 : i32
    return %c0_i32, %c0_i32_0 : i32, i32
  }
  func.func @transform_4(%arg0: i32) -> (i32, i32) {
    %c0_i32 = arith.constant 0 : i32
    %c0_i32_0 = arith.constant 0 : i32
    %c0_i32_1 = arith.constant 0 : i32
    return %c0_i32, %c0_i32_0 : i32, i32
  }
  func.func @transform_5(%arg0: i32) -> (i32, i32) {
    %c0_i32 = arith.constant 0 : i32
    %c0_i32_0 = arith.constant 0 : i32
    %c0_i32_1 = arith.constant 0 : i32
    return %c0_i32, %c0_i32_0 : i32, i32
  }
  func.func @transform_6(%arg0: i32) -> (i32, i32) {
    %c0_i32 = arith.constant 0 : i32
    %c0_i32_0 = arith.constant 0 : i32
    %c0_i32_1 = arith.constant 0 : i32
    return %c0_i32, %c0_i32_0 : i32, i32
  }
  func.func @transform_7(%arg0: i32) -> (i32, i32) {
    %c0_i32 = arith.constant 0 : i32
    %c0_i32_0 = arith.constant 0 : i32
    return %c0_i32, %arg0 : i32, i32
  }
}

</mosaic_0001>

<bundles_post_ra>
// kernel: tpu_custom_call.1
= control target key start
LH: loop header
LB: loop body
LE: loop exit
PB: predicated region body
PF: predicated region fallthrough
CT: control target
= control target key end

     0   :  { %vm56_vm0 = vcmask 64512   ;;  %v607_v5 = vmov 0   ;;  %s748_s0 = inlined_call_operand.vmem [shape: f32[8,8], index: 0, kind: input, shape index: {}]   ;;  %s749_s1 = inlined_call_operand.vmem [shape: f32[32,8], index: 1, kind: input, shape index: {}]   ;;  %s750_s2 = inlined_call_operand.vmem [shape: f32[32,1], index: 2, kind: input, shape index: {}]   ;;  %s751_s3 = inlined_call_operand.vmem [shape: f32[64,32], index: 3, kind: input, shape index: {}]   ;;  %s752_s4 = inlined_call_operand.vmem [shape: f32[64,1], index: 4, kind: input, shape index: {}]   ;;  %s753_s5 = inlined_call_operand.vmem [shape: f32[8,64], index: 5, kind: input, shape index: {}]   ;;  %s754_s6 = inlined_call_operand.vmem [shape: f32[8,1], index: 6, kind: input, shape index: {}]   ;;  %s755_s7 = inlined_call_operand.hbm [shape: f32[8,8], index: 7, kind: output, shape index: {}]  }
   0x1   :  { %v27_v0 = vld [vmem:[%s748_s0] sm:$0xff]  ;;  %v29_v2 = vld [vmem:[%s749_s1 + $0x8] sm:$0xff]  ;;  %v30_v3 = vld [vmem:[%s749_s1 + $0x10] sm:$0xff]  ;;  %555 = vset.pattern.permute.xlu0 %v607_v5  ;;  %556 = vset.pattern.permute.xlu1 %v607_v5 }
   0x2   :  { %v28_v1 = vld [vmem:[%s749_s1] sm:$0xff]  ;;  %504 = vmatprep.subr.mxu0 %v27_v0  ;;  %v35_v4 = vld [vmem:[%s750_s2 + $0x18] sm:$0xff]  ;;  %v33_v6 = vld [vmem:[%s750_s2 + $0x8] sm:$0xff] }
   0x3   :  { %506 = vmatprep.mubr.msk.f32.mxu0 %vm56_vm0, %v28_v1  ;;  %505 = vmatpush3.msra.mxu0 %v27_v0  ;;  %v31_v7 = vld [vmem:[%s749_s1 + $0x18] sm:$0xff]  ;;  %v34_v8 = vld [vmem:[%s750_s2 + $0x10] sm:$0xff]  ;;  %v32_v9 = vld [vmem:[%s750_s2] sm:$0xff] }
   0x4   :  { %507 = vmatmul.mubr.msk.f32.vlgmr.msra.gmra.mxu0 %vm56_vm0, %v29_v2  ;;  %53 = vperm.xlu0 %555, %v35_v4  }
   0x5   :  { %509 = vmatprep.mubr.msk.f32.mxu0 %vm56_vm0, %v30_v3  ;;  %43 = vperm.xlu1 %556, %v33_v6  }
   0x6   :  { %12 = vsyncpa [#allocation3], 0  ;;  %v173_v10 = vld [vmem:[%s752_s4 + $0x38] sm:$0xff]  ;;  %v172_v11 = vld [vmem:[%s752_s4 + $0x30] sm:$0xff]  ;;  %vm214_vm1 = vcmask 261120   ;;  %v608_v43 = vmov 0.0  }
   0x7   :  { %v171_v12 = vld [vmem:[%s752_s4 + $0x28] sm:$0xff]  ;;  %v170_v13 = vld [vmem:[%s752_s4 + $0x20] sm:$0xff]  ;;  %v169_v14 = vld [vmem:[%s752_s4 + $0x18] sm:$0xff]  ;;  %532 = vmatprep.subr.mxu0 %v608_v43  ;;  %vm609_vm2 = vmmov 0   ;;  %vm359_vm3 = vcmask 523264  }
   0x8   :  { %510 = vmatmul.mubr.msk.f32.gmra.mxu0 %vm56_vm0, %v31_v7  ;;  %48 = vperm.xlu0 %555, %v34_v8   ;;  %v168_v15 = vld [vmem:[%s752_s4 + $0x10] sm:$0xff]  ;;  %v167_v16 = vld [vmem:[%s752_s4 + $0x8] sm:$0xff]  ;;  %v166_v17 = vld [vmem:[%s752_s4] sm:$0xff] }
   0x9   :  { %38 = vperm.xlu1 %556, %v32_v9   ;;  %v353_v18 = vld [vmem:[%s754_s6] sm:$0xff]  ;;  %v159_v36 = vld [vmem:[%s751_s3 + $0x8] sm:$0xff]  ;;  %v160_v37 = vld [vmem:[%s751_s3 + $0x10] sm:$0xff]  ;;  %548 = vmatprep.mubr.msk.f32.mxu0 %vm609_vm2, %v608_v43 }
   0xa   :  { %v158_v19 = vld [vmem:[%s751_s3] sm:$0xff]  ;;  %v161_v38 = vld [vmem:[%s751_s3 + $0x18] sm:$0xff]  ;;  %v163_v40 = vld [vmem:[%s751_s3 + $0x28] sm:$0xff] }
   0xb   :  { %520 = vmatprep.mubr.msk.f32.mxu1 %vm214_vm1, %v158_v19  ;;  %v162_v39 = vld [vmem:[%s751_s3 + $0x20] sm:$0xff]  ;;  %v164_v41 = vld [vmem:[%s751_s3 + $0x30] sm:$0xff]  ;;  %v165_v42 = vld [vmem:[%s751_s3 + $0x38] sm:$0xff] }
   0xc   :  { %211 = vperm.xlu0 %555, %v173_v10  }
   0xd   :  { %206 = vperm.xlu1 %556, %v172_v11   ;;  %v352_v11 = vld [vmem:[%s753_s5] sm:$0xff]  ;;  %s610_s5 = smov [#allocation2]  }
   0xe   :  { %s457_s23 = sshll.u32 %s610_s5, 4  ;;  %s458_s23 = int_to_ptr.vmem [resolvable:$true] %s457_s23 }
   0xf   :  { %s585_s24 = scalar_lea.vmem %s458_s23, 128  ;;  %p590_p1 = scmp.lt.s32.totalorder %s458_s23, %s458_s23 }
  0x10   :  { %201 = vperm.xlu0 %555, %v171_v12   ;;  %p586_p0 = scmp.ne.s32.totalorder %s458_s23, %s585_s24  ;;  %p591_p2 = scmp.lt.s32.totalorder %s585_s24, %s585_s24 }
  0x11   :  { %196 = vperm.xlu1 %556, %v170_v13  }
  0x12   :  { %p592_p3 = por %p591_p2, %p590_p1 }
  0x14   :  { %191 = vperm.xlu0 %555, %v169_v14   ;;  %p593_p4 = pnand %p592_p3, %p586_p0 }
  0x15   :  { %186 = vperm.xlu1 %556, %v168_v15  }
  0x18   :  { %181 = vperm.xlu0 %555, %v167_v16  }
  0x19   :  { %176 = vperm.xlu1 %556, %v166_v17  }
  0x1c   :  { %356 = vperm.xlu0 %555, %v353_v18  }
  0x7f   :  { %v54_v20 = vpop.permute.xlu0 %53 }
  0x80   :  { %v44_v22 = vpop.permute.xlu1 %43 }
  0x83   :  { %v49_v26 = vpop.permute.xlu0 %48 }
  0x84   :  { %v39_v30 = vpop.permute.xlu1 %38 }
  0x87   :  { %v212_v46 = vpop.permute.xlu0 %211 }
  0x88   :  { %v207_v48 = vpop.permute.xlu1 %206 }
  0x8b   :  { %v202_v51 = vpop.permute.xlu0 %201 }
  0x8c   :  { %v197_v53 = vpop.permute.xlu1 %196 }
  0x8f   :  { %v192_v59 = vpop.permute.xlu0 %191 }
  0x90   :  { %v187_v61 = vpop.permute.xlu1 %186 }
  0x93   :  { %v182_v0 = vpop.permute.xlu0 %181 }
  0x94   :  { %v177_v2 = vpop.permute.xlu1 %176 }
  0x97   :  { %v357_v13 = vpop.permute.xlu0 %356 }
  0xc4   :  { %v508_v21 = vpop.f32.mrf.mxu0 }
  0xc5   :  { %v141_v28 = vadd.f32 %v508_v21, %v44_v22  ;;  %v433_v21 = vlaneseq }
  0xc6   :  { %v135_v23 = vpop.f32.mrf.mxu0 }
  0xc7   :  { %v136_v31 = vadd.f32 %v135_v23, %v39_v30  ;;  %v434_v23 = vshrl.u32 %v433_v21, 7 }
  0xc8   :  { %v511_v24 = vpop.f32.mrf.mxu0 }
  0xc9   :  { %v151_v25 = vadd.f32 %v511_v24, %v54_v20  ;;  %vm448_vm5 = vcmp.ge.s32.totalorder %v434_v23, 4 }
  0xca   :  { %v145_v27 = vpop.f32.mrf.mxu0 }
  0xcb   :  { %557 = vtanh.f32 %v151_v25  ;;  %v146_v29 = vadd.f32 %v145_v27, %v49_v26 }
  0xcd   :  { %559 = vtanh.f32 %v146_v29 }
  0xce   :  { %561 = vtanh.f32 %v141_v28 }
  0xcf   :  { %563 = vtanh.f32 %v136_v31 }
  0xd8   :  { %v558_v32 = vpop.eup %557 }
  0xd9   :  { %512 = vmatprep.subr.mxu1 %v558_v32 }
  0xda   :  { %v560_v33 = vpop.eup %559  ;;  %513 = vmatpush3.msra.mxu1 %v558_v32 }
  0xdb   :  { %514 = vmatprep.subr.mxu1 %v560_v33  ;;  %v562_v34 = vpop.eup %561 }
  0xdc   :  { %515 = vmatpush3.msra.mxu1 %v560_v33  ;;  %v564_v35 = vpop.eup %563 }
  0xdd   :  { %516 = vmatprep.subr.mxu1 %v562_v34 }
  0xde   :  { %517 = vmatpush3.msra.mxu1 %v562_v34 }
  0xdf   :  { %518 = vmatprep.subr.mxu1 %v564_v35 }
  0xe0   :  { %519 = vmatpush3.msra.mxu1 %v564_v35 }
  0xe1   :  { %521 = vmatmul.mubr.msk.f32.vlgmr.msra.gmra.mxu1 %vm214_vm1, %v159_v36 }
  0xe2   :  { %523 = vmatprep.mubr.msk.f32.mxu1 %vm214_vm1, %v160_v37 }
  0xe5   :  { %524 = vmatmul.mubr.msk.f32.gmra.mxu1 %vm214_vm1, %v161_v38 }
  0xe6   :  { %526 = vmatprep.mubr.msk.f32.mxu1 %vm214_vm1, %v162_v39 }
  0xe9   :  { %527 = vmatmul.mubr.msk.f32.gmra.mxu1 %vm214_vm1, %v163_v40 }
  0xea   :  { %529 = vmatprep.mubr.msk.f32.mxu1 %vm214_vm1, %v164_v41 }
  0xed   :  { %530 = vmatmul.mubr.msk.f32.gmra.mxu1 %vm214_vm1, %v165_v42 }
 0x1a1   :  { %v522_v44 = vpop.f32.mrf.mxu1 }
 0x1a2   :  { %v311_v1 = vadd.f32 %v522_v44, %v182_v0 }
 0x1a3   :  { %v305_v45 = vpop.f32.mrf.mxu1 }
 0x1a4   :  { %v306_v3 = vadd.f32 %v305_v45, %v177_v2 }
 0x1a5   :  { %v525_v47 = vpop.f32.mrf.mxu1 }
 0x1a6   :  { %v321_v62 = vadd.f32 %v525_v47, %v192_v59 }
 0x1a7   :  { %v315_v49 = vpop.f32.mrf.mxu1 }
 0x1a8   :  { %v316_v63 = vadd.f32 %v315_v49, %v187_v61 }
 0x1a9   :  { %v528_v50 = vpop.f32.mrf.mxu1 }
 0x1aa   :  { %v331_v57 = vadd.f32 %v528_v50, %v202_v51 }
 0x1ab   :  { %v325_v52 = vpop.f32.mrf.mxu1 }
 0x1ac   :  { %v326_v60 = vadd.f32 %v325_v52, %v197_v53 }
 0x1ad   :  { %v531_v54 = vpop.f32.mrf.mxu1 }
 0x1ae   :  { %v341_v55 = vadd.f32 %v531_v54, %v212_v46 }
 0x1af   :  { %v335_v56 = vpop.f32.mrf.mxu1 }
 0x1b0   :  { %565 = vtanh.f32 %v341_v55  ;;  %v336_v58 = vadd.f32 %v335_v56, %v207_v48 }
 0x1b2   :  { %567 = vtanh.f32 %v336_v58 }
 0x1b3   :  { %569 = vtanh.f32 %v331_v57 }
 0x1b4   :  { %571 = vtanh.f32 %v326_v60 }
 0x1b5   :  { %573 = vtanh.f32 %v321_v62 }
 0x1b6   :  { %575 = vtanh.f32 %v316_v63 }
 0x1b7   :  { %577 = vtanh.f32 %v311_v1 }
 0x1b8   :  { %579 = vtanh.f32 %v306_v3 }
 0x1bd   :  { %v566_v4 = vpop.eup %565 }
 0x1be   :  { %533 = vmatpush3.msra.mxu0 %v566_v4 }
 0x1bf   :  { %v568_v5 = vpop.eup %567  ;;  %534 = vmatprep.subr.mxu0 %v608_v43 }
 0x1c0   :  { %535 = vmatpush3.msra.mxu0 %v568_v5  ;;  %v570_v6 = vpop.eup %569 }
 0x1c1   :  { %536 = vmatprep.subr.mxu0 %v608_v43  ;;  %v572_v7 = vpop.eup %571 }
 0x1c2   :  { %537 = vmatpush3.msra.mxu0 %v570_v6  ;;  %v574_v8 = vpop.eup %573 }
 0x1c3   :  { %538 = vmatprep.subr.mxu0 %v608_v43  ;;  %v576_v9 = vpop.eup %575 }
 0x1c4   :  { %539 = vmatpush3.msra.mxu0 %v572_v7  ;;  %v578_v10 = vpop.eup %577 }
 0x1c5   :  { %540 = vmatprep.subr.mxu0 %v608_v43  ;;  %v580_v12 = vpop.eup %579 }
 0x1c6   :  { %541 = vmatpush3.msra.mxu0 %v574_v8 }
 0x1c7   :  { %542 = vmatprep.subr.mxu0 %v608_v43 }
 0x1c8   :  { %543 = vmatpush3.msra.mxu0 %v576_v9 }
 0x1c9   :  { %544 = vmatprep.subr.mxu0 %v608_v43 }
 0x1ca   :  { %545 = vmatpush3.msra.mxu0 %v578_v10 }
 0x1cb   :  { %546 = vmatprep.subr.mxu0 %v608_v43 }
 0x1cc   :  { %547 = vmatpush3.msra.mxu0 %v580_v12 }
 0x1cd   :  { %549 = vmatmul.mubr.msk.f32.vlgmr.msra.gmra.mxu0 %vm359_vm3, %v352_v11 }
 0x28d   :  { %v429_v14 = vpop.f32.mrf.mxu0 }
 0x28e   :  { %v430_v15 = vadd.f32 %v429_v14, %v357_v13 }
 0x28f   :  { %v550_v16 = vpop.f32.mrf.mxu0 }
 0x290   :  { %v436_v17 = vmul.f32 1.442695, %v430_v15  ;;  %vm435_vm6 = vcmp.gt.f32.partialorder %v430_v15, 20.0 }
 0x292   :  { %581 = vpow2.f32 %v436_v17 }
 0x29f   :  { %v582_v18 = vpop.eup %581 }
 0x2a0   :  { %v438_v19 = vadd.f32 1.0, %v582_v18  ;;  %v441_v20 = vmul.f32 -0.5, %v582_v18  ;;  %v444_v24 = vand.u32 2147483647, %v582_v18 }
 0x2a2   :  { %583 = vlog2.f32 %v438_v19  ;;  %v442_v22 = vadd.f32 1.0, %v441_v20  ;;  %vm445_vm4 = vcmp.lt.f32.partialorder %v444_v24, 0.0004427343 }
 0x2a4   :  { %v443_v27 = vmul.f32 %v582_v18, %v442_v22 }
 0x2af   :  { %v584_v25 = vpop.eup %583 }
 0x2b0   :  { %v440_v26 = vmul.f32 0.6931472, %v584_v25 }
 0x2b2   :  { %v446_v28 = vsel %vm445_vm4, %v443_v27, %v440_v26 }
 0x2b3   :  { %v447_v29 = vsel %vm435_vm6, %v430_v15, %v446_v28 }
 0x2b4   :  { %v449_v30 = vsel %vm448_vm5, %v447_v29, %v430_v15 }
 0x2b5   :  { %450 = vst.msk [vmem:[#allocation2] sm:$0xff] %vm56_vm0, %v449_v30 }
 0x2b6   :  { %596 = shalt.err (!%p593_p4)
}
 0x2b7   :  { %460 = dma.vmem_to_hbm [thread:$0]  %s458_s23, 128, %s755_s7, [#allocation3]  }
 0x2b8   :  { %605 = dma.done.wait [#allocation3], 128  }
 0x2b9   :  { %606 = vsyncadd [#allocation3], 4294967168 }
 0x2ba   :  { %464 = vsyncpa [#allocation3], 1 }

</bundles_post_ra>
